<compile_context>
chip_gen: v7x
topology: tpu7x:2x2x1
jax: 0.10.0
libtpu: 0.0.40
codegen_flags: <defaults>
</compile_context>

<pallas_src>
import functools

import jax
import jax.numpy as jnp
from jax import lax
from jax.experimental import pallas as pl
from jax.experimental.pallas import tpu as pltpu


def _round_up(x, m):
  return (x + m - 1) // m * m


def _stats_kernel(rows_total, tiles_per_core, tm,
                  x_ref, mask_ref, sum_ref, sumsq_ref):
  """Pass 1: per-core masked partial sum / sum-of-squares accumulation."""
  c = pl.program_id(0)          # core (parallel) axis
  t = pl.program_id(1)          # row-tile (reduction / arbitrary) axis

  @pl.when(t == 0)
  def _():
    sum_ref[...] = jnp.zeros_like(sum_ref)
    sumsq_ref[...] = jnp.zeros_like(sumsq_ref)

  # Logical (unclamped) first row of this tile: masks both the ragged tail of
  # the array and any overhang tiles created by the per-core split.
  row0 = (c * tiles_per_core + t) * tm
  row_ids = lax.broadcasted_iota(jnp.int32, (tm, 1), 0) + row0
  valid = jnp.logical_and(row_ids < rows_total, mask_ref[...] > 0.0)  # (tm, 1)

  x = x_ref[...].astype(jnp.float32)        # (tm, D)
  xm = jnp.where(valid, x, 0.0)             # select: robust to OOB garbage

  # Sublane-dense accumulation: fold tm rows down to 8 sublanes with full-vreg
  # VPU adds (tile-aligned reshape); the final 8 -> 1 happens in JAX.
  d = xm.shape[1]
  sum_ref[...] += xm.reshape(tm // 8, 8, d).sum(axis=0)
  sumsq_ref[...] += (xm * xm).reshape(tm // 8, 8, d).sum(axis=0)


def _norm_kernel(x_ref, mask_ref, v_ref, b_ref, out_ref):
  """Pass 2: out = (x * v + b') * mask — pure bandwidth-bound elementwise."""
  x = x_ref[...].astype(jnp.float32)
  m = mask_ref[...]
  out_ref[...] = ((x * v_ref[...] + b_ref[...]) * m).astype(out_ref.dtype)


def batch_norm_forward(inputs, input_paddings, scale, bias,
                       running_mean, running_var,
                       momentum=0.999, epsilon=0.001,
                       row_tile=None):
  """Training-mode BatchNorm forward.

  Returns (output, new_running_mean, new_running_var); output keeps the dtype
  of `inputs` (bf16 stays bf16 in HBM; math is f32 in-kernel).
  """
  B, T, D = inputs.shape
  rows = B * T
  x = inputs.reshape(rows, D)
  # Lane-friendly (rows, 1) validity column computed once; 1.0 == valid frame.
  mask = (1.0 - input_paddings.astype(jnp.float32)).reshape(rows, 1)

  if row_tile is None:
    # Big tiles amortize the ~0.35us per grid-step overhead; 2x rows for 16-bit
    # inputs.  row_tile <= 2048 keeps the double-buffered pass-2 working set
    # well inside the 32 MiB scoped-VMEM limit on every generation (incl. v7x).
    row_tile = 2048 if jnp.dtype(inputs.dtype).itemsize <= 2 else 1024
  assert row_tile % 8 == 0, "row_tile must be a multiple of 8 (sublane)"
  tm = min(row_tile, _round_up(rows, 8))
  n_tiles = pl.cdiv(rows, tm)

  # Megacore split for the streaming reduction: 2 cores on v7x, harmless
  # serial loop on single-TC v5e/v6e.
  nc = 2 if n_tiles >= 2 else 1
  tpc = pl.cdiv(n_tiles, nc)

  def _tile_idx(c, t):
    # Clamp so every DMA stays in-bounds; overhang tiles contribute nothing
    # because the kernel masks rows >= rows_total via the logical row ids.
    return (jnp.minimum(c * tpc + t, n_tiles - 1), 0)

  # ---- Pass 1: partial statistics (single streaming pass over x) ----
  psum, psumsq = pl.pallas_call(
      functools.partial(_stats_kernel, rows, tpc, tm),
      grid=(nc, tpc),
      in_specs=[pl.BlockSpec((tm, D), _tile_idx),
                pl.BlockSpec((tm, 1), _tile_idx)],
      out_specs=(pl.BlockSpec((None, 8, D), lambda c, t: (c, 0, 0)),
                 pl.BlockSpec((None, 8, D), lambda c, t: (c, 0, 0))),
      out_shape=(jax.ShapeDtypeStruct((nc, 8, D), jnp.float32),
                 jax.ShapeDtypeStruct((nc, 8, D), jnp.float32)),
      compiler_params=pltpu.CompilerParams(
          dimension_semantics=("parallel", "arbitrary"),
          vmem_limit_bytes=32 * 1024 * 1024),
  )(x, mask)

  # Tiny (D,)-sized combine + finalize in plain JAX.  Valid-frame count is
  # hoisted here (depends only on the small padding array).
  count = jnp.maximum(jnp.sum(mask), 1.0)          # guard all-padded batch
  mean = psum.sum(axis=(0, 1)) / count                         # (D,)
  var = jnp.maximum(psumsq.sum(axis=(0, 1)) / count - mean * mean, 0.0)
  v = (1.0 + scale.astype(jnp.float32)) * lax.rsqrt(var + epsilon)
  b_shift = bias.astype(jnp.float32) - mean * v                # shifted bias

  # ---- Pass 2: normalization (independent row tiles, megacore-parallel) ----
  out_flat = pl.pallas_call(
      _norm_kernel,
      grid=(n_tiles,),
      in_specs=[pl.BlockSpec((tm, D), lambda i: (i, 0)),
                pl.BlockSpec((tm, 1), lambda i: (i, 0)),
                pl.BlockSpec((1, D), lambda i: (0, 0)),
                pl.BlockSpec((1, D), lambda i: (0, 0))],
      out_specs=pl.BlockSpec((tm, D), lambda i: (i, 0)),
      out_shape=jax.ShapeDtypeStruct((rows, D), inputs.dtype),
      compiler_params=pltpu.CompilerParams(
          dimension_semantics=("parallel",),
          vmem_limit_bytes=32 * 1024 * 1024),
  )(x, mask, v.reshape(1, D), b_shift.reshape(1, D))

  out = out_flat.reshape(B, T, D)
  # Buffer EMA updates: plain-JAX glue, matching the module exactly (biased
  # /count variance feeds running_var).
  new_running_mean = momentum * running_mean + (1.0 - momentum) * mean
  new_running_var = momentum * running_var + (1.0 - momentum) * var
  return out, new_running_mean, new_running_var


def _reference(inputs, input_paddings, scale, bias,
               running_mean, running_var, momentum, epsilon):
  """Pure-JAX replica of the PyTorch module's training-mode forward."""
  mask = (1.0 - input_paddings)[:, :, None]
  count = mask.sum()
  masked = inputs * mask
  mean = masked.sum(axis=(0, 1)) / count
  var = (jnp.square(masked - mean) * mask).sum(axis=(0, 1)) / count
  v = (1.0 + scale) * lax.rsqrt(var + epsilon)
  bn = (inputs - mean) * v + bias
  out = bn * mask
  new_rm = momentum * running_mean + (1.0 - momentum) * mean
  new_rv = momentum * running_var + (1.0 - momentum) * var
  return out, new_rm, new_rv


if __name__ == "__main__":
  # Small shapes consistent with the module: (batch, time, encoder_dim).
  # D = 128 keeps the lane axis dense (production encoder_dim = 512).
  B, T, D = 2, 8, 128
  eps = 0.001
  momentum = 0.999

  key = jax.random.PRNGKey(0)
  k_x, k_s, k_b = jax.random.split(key, 3)

  x = jax.random.normal(k_x, (B, T, D), dtype=jnp.float32)
  # Last 2 frames of each utterance are padded (1.0 == padded).
  pads = jnp.concatenate(
      [jnp.zeros((B, T - 2), jnp.float32), jnp.ones((B, 2), jnp.float32)],
      axis=1)

  scale = 0.1 * jax.random.normal(k_s, (D,), dtype=jnp.float32)
  bias = 0.1 * jax.random.normal(k_b, (D,), dtype=jnp.float32)
  running_mean = jnp.zeros((D,), jnp.float32)
  running_var = jnp.ones((D,), jnp.float32)

  ref_out, ref_rm, ref_rv = _reference(
      x, pads, scale, bias, running_mean, running_var, momentum, eps)

  # 1) Single-tile path (rows <= row_tile).
  out, new_rm, new_rv = batch_norm_forward(
      x, pads, scale, bias, running_mean, running_var,
      momentum=momentum, epsilon=eps)
  jax.block_until_ready((out, new_rm, new_rv))
  assert jnp.allclose(out, ref_out, atol=2e-5, rtol=2e-5), "output mismatch"
  assert jnp.allclose(new_rm, ref_rm, atol=1e-6, rtol=1e-5), "running_mean mismatch"
  assert jnp.allclose(new_rv, ref_rv, atol=1e-6, rtol=1e-5), "running_var mismatch"

  # 2) Multi-tile reduction path (2 tiles -> exercises the (parallel, arbitrary)
  # megacore grid and init/accumulate logic of pass 1).
  out2, _, _ = batch_norm_forward(
      x, pads, scale, bias, running_mean, running_var,
      momentum=momentum, epsilon=eps, row_tile=8)
  jax.block_until_ready(out2)
  assert jnp.allclose(out2, ref_out, atol=2e-5, rtol=2e-5), "tiled output mismatch"

  # 3) Ragged-tail path (rows not a multiple of the tile) -> exercises the
  # in-kernel row-id masking and dropped out-of-bounds output writes.
  T3 = 7
  x3 = jax.random.normal(jax.random.PRNGKey(1), (B, T3, D), dtype=jnp.float32)
  pads3 = jnp.concatenate(
      [jnp.zeros((B, T3 - 2), jnp.float32), jnp.ones((B, 2), jnp.float32)],
      axis=1)
  ref_out3, ref_rm3, ref_rv3 = _reference(
      x3, pads3, scale, bias, running_mean, running_var, momentum, eps)
  out3, rm3, rv3 = batch_norm_forward(
      x3, pads3, scale, bias, running_mean, running_var,
      momentum=momentum, epsilon=eps, row_tile=8)
  jax.block_until_ready((out3, rm3, rv3))
  assert jnp.allclose(out3, ref_out3, atol=2e-5, rtol=2e-5), "ragged output mismatch"
  assert jnp.allclose(rm3, ref_rm3, atol=1e-6, rtol=1e-5), "ragged running_mean mismatch"
  assert jnp.allclose(rv3, ref_rv3, atol=1e-6, rtol=1e-5), "ragged running_var mismatch"

  print("KERNEL_OK")
</pallas_src>

<mosaic_0001>
module attributes {stable_mosaic.version = 11 : i64} {
  func.func @_stats_kernel(%arg0: i32, %arg1: i32, %arg2: memref<16x128xf32, #tpu.memory_space<vmem>>, %arg3: memref<16x1xf32, #tpu.memory_space<vmem>>, %arg4: memref<1x8x128xf32, #tpu.memory_space<vmem>>, %arg5: memref<1x8x128xf32, #tpu.memory_space<vmem>>) attributes {dimension_semantics = [#tpu.dimension_semantics<parallel>, #tpu.dimension_semantics<arbitrary>], iteration_bounds = array<i64: 1, 1>, scalar_prefetch = 0 : i64, scratch_operands = 0 : i64, tpu.core_type = #tpu.core_type<tc>, window_params = [{transform_indices = @transform_0, window_bounds = array<i64: 16, 128>}, {transform_indices = @transform_1, window_bounds = array<i64: 16, 1>}, {transform_indices = @transform_2, window_bounds = array<i64: 1, 8, 128>}, {transform_indices = @transform_3, window_bounds = array<i64: 1, 8, 128>}]} {
    %c0_i32 = arith.constant 0 : i32
    %0 = arith.cmpi eq, %arg1, %c0_i32 : i32
    %1 = arith.extui %0 : i1 to i32
    %c0_i32_0 = arith.constant 0 : i32
    %2 = arith.cmpi ne, %1, %c0_i32_0 : i32
    scf.if %2 {
      %cst_20 = arith.constant 0.000000e+00 : f32
      %37 = vector.broadcast %cst_20 : f32 to vector<8x128xf32>
      %c0_21 = arith.constant 0 : index
      %c0_22 = arith.constant 0 : index
      %c0_23 = arith.constant 0 : index
      %38 = vector.load %arg4[%c0_21, %c0_22, %c0_23] : memref<1x8x128xf32, #tpu.memory_space<vmem>>, vector<1x8x128xf32>
      %39 = vector.shape_cast %38 : vector<1x8x128xf32> to vector<8x128xf32>
      %40 = vector.shape_cast %37 : vector<8x128xf32> to vector<1x8x128xf32>
      tpu.vector_store %arg4[%c0_21, %c0_22, %c0_23], %40 {strides = array<i32>} : memref<1x8x128xf32, #tpu.memory_space<vmem>>, vector<1x8x128xf32>,
      %cst_24 = arith.constant 0.000000e+00 : f32
      %41 = vector.broadcast %cst_24 : f32 to vector<8x128xf32>
      %c0_25 = arith.constant 0 : index
      %c0_26 = arith.constant 0 : index
      %c0_27 = arith.constant 0 : index
      %42 = vector.load %arg5[%c0_25, %c0_26, %c0_27] : memref<1x8x128xf32, #tpu.memory_space<vmem>>, vector<1x8x128xf32>
      %43 = vector.shape_cast %42 : vector<1x8x128xf32> to vector<8x128xf32>
      %44 = vector.shape_cast %41 : vector<8x128xf32> to vector<1x8x128xf32>
      tpu.vector_store %arg5[%c0_25, %c0_26, %c0_27], %44 {strides = array<i32>} : memref<1x8x128xf32, #tpu.memory_space<vmem>>, vector<1x8x128xf32>,
    } else {
    }
    %c1_i32 = arith.constant 1 : i32
    %3 = arith.muli %arg0, %c1_i32 : i32
    %4 = arith.addi %3, %arg1 : i32
    %c16_i32 = arith.constant 16 : i32
    %5 = arith.muli %4, %c16_i32 : i32
    %6 = tpu.iota {dimensions = array<i32: 0>} : vector<16x1xi32>
    %7 = vector.broadcast %5 : i32 to vector<16x1xi32>
    %8 = arith.addi %6, %7 : vector<16x1xi32>
    %c16_i32_1 = arith.constant 16 : i32
    %9 = vector.broadcast %c16_i32_1 : i32 to vector<16x1xi32>
    %10 = arith.cmpi slt, %8, %9 : vector<16x1xi32>
    %c0 = arith.constant 0 : index
    %c0_2 = arith.constant 0 : index
    %11 = vector.load %arg3[%c0, %c0_2] : memref<16x1xf32, #tpu.memory_space<vmem>>, vector<16x1xf32>
    %cst = arith.constant 0.000000e+00 : f32
    %12 = vector.broadcast %cst : f32 to vector<16x1xf32>
    %13 = arith.cmpf ogt, %11, %12 : vector<16x1xf32>
    %14 = arith.andi %10, %13 : vector<16x1xi1>
    %c0_3 = arith.constant 0 : index
    %c0_4 = arith.constant 0 : index
    %15 = vector.load %arg2[%c0_3, %c0_4] : memref<16x128xf32, #tpu.memory_space<vmem>>, vector<16x128xf32>
    %cst_5 = arith.constant 0.000000e+00 : f32
    %16 = vector.shape_cast %14 : vector<16x1xi1> to vector<16x1xi1>
    %17 = vector.broadcast %16 : vector<16x1xi1> to vector<16x128xi1>
    %18 = vector.broadcast %cst_5 : f32 to vector<16x128xf32>
    %19 = arith.select %17, %15, %18 : vector<16x128xi1>, vector<16x128xf32>
    %c0_6 = arith.constant 0 : index
    %c0_7 = arith.constant 0 : index
    %c0_8 = arith.constant 0 : index
    %20 = vector.load %arg4[%c0_6, %c0_7, %c0_8] : memref<1x8x128xf32, #tpu.memory_space<vmem>>, vector<1x8x128xf32>
    %21 = vector.shape_cast %20 : vector<1x8x128xf32> to vector<8x128xf32>
    %22 = vector.shape_cast %19 : vector<16x128xf32> to vector<2x8x128xf32>
    %cst_9 = arith.constant dense<0.000000e+00> : vector<8x128xf32>
    %23 = vector.multi_reduction <add>, %22, %cst_9 [0] : vector<2x8x128xf32> to vector<8x128xf32>
    %24 = arith.addf %21, %23 : vector<8x128xf32>
    %c0_10 = arith.constant 0 : index
    %c0_11 = arith.constant 0 : index
    %c0_12 = arith.constant 0 : index
    %25 = vector.load %arg4[%c0_10, %c0_11, %c0_12] : memref<1x8x128xf32, #tpu.memory_space<vmem>>, vector<1x8x128xf32>
    %26 = vector.shape_cast %25 : vector<1x8x128xf32> to vector<8x128xf32>
    %27 = vector.shape_cast %24 : vector<8x128xf32> to vector<1x8x128xf32>
    tpu.vector_store %arg4[%c0_10, %c0_11, %c0_12], %27 {strides = array<i32>} : memref<1x8x128xf32, #tpu.memory_space<vmem>>, vector<1x8x128xf32>,
    %c0_13 = arith.constant 0 : index
    %c0_14 = arith.constant 0 : index
    %c0_15 = arith.constant 0 : index
    %28 = vector.load %arg5[%c0_13, %c0_14, %c0_15] : memref<1x8x128xf32, #tpu.memory_space<vmem>>, vector<1x8x128xf32>
    %29 = vector.shape_cast %28 : vector<1x8x128xf32> to vector<8x128xf32>
    %30 = arith.mulf %19, %19 : vector<16x128xf32>
    %31 = vector.shape_cast %30 : vector<16x128xf32> to vector<2x8x128xf32>
    %cst_16 = arith.constant dense<0.000000e+00> : vector<8x128xf32>
    %32 = vector.multi_reduction <add>, %31, %cst_16 [0] : vector<2x8x128xf32> to vector<8x128xf32>
    %33 = arith.addf %29, %32 : vector<8x128xf32>
    %c0_17 = arith.constant 0 : index
    %c0_18 = arith.constant 0 : index
    %c0_19 = arith.constant 0 : index
    %34 = vector.load %arg5[%c0_17, %c0_18, %c0_19] : memref<1x8x128xf32, #tpu.memory_space<vmem>>, vector<1x8x128xf32>
    %35 = vector.shape_cast %34 : vector<1x8x128xf32> to vector<8x128xf32>
    %36 = vector.shape_cast %33 : vector<8x128xf32> to vector<1x8x128xf32>
    tpu.vector_store %arg5[%c0_17, %c0_18, %c0_19], %36 {strides = array<i32>} : memref<1x8x128xf32, #tpu.memory_space<vmem>>, vector<1x8x128xf32>,
    return
  }
  func.func @transform_0(%arg0: i32, %arg1: i32) -> (i32, i32) {
    %c1_i32 = arith.constant 1 : i32
    %0 = arith.muli %arg0, %c1_i32 : i32
    %1 = arith.addi %0, %arg1 : i32
    %c0_i32 = arith.constant 0 : i32
    %2 = arith.minsi %1, %c0_i32 : i32
    %c0_i32_0 = arith.constant 0 : i32
    %c0_i32_1 = arith.constant 0 : i32
    return %2, %c0_i32_0 : i32, i32
  }
  func.func @transform_1(%arg0: i32, %arg1: i32) -> (i32, i32) {
    %c1_i32 = arith.constant 1 : i32
    %0 = arith.muli %arg0, %c1_i32 : i32
    %1 = arith.addi %0, %arg1 : i32
    %c0_i32 = arith.constant 0 : i32
    %2 = arith.minsi %1, %c0_i32 : i32
    %c0_i32_0 = arith.constant 0 : i32
    %c0_i32_1 = arith.constant 0 : i32
    return %2, %c0_i32_0 : i32, i32
  }
  func.func @transform_2(%arg0: i32, %arg1: i32) -> (i32, i32, i32) {
    %c0_i32 = arith.constant 0 : i32
    %c0_i32_0 = arith.constant 0 : i32
    %c0_i32_1 = arith.constant 0 : i32
    return %arg0, %c0_i32, %c0_i32_0 : i32, i32, i32
  }
  func.func @transform_3(%arg0: i32, %arg1: i32) -> (i32, i32, i32) {
    %c0_i32 = arith.constant 0 : i32
    %c0_i32_0 = arith.constant 0 : i32
    %c0_i32_1 = arith.constant 0 : i32
    return %arg0, %c0_i32, %c0_i32_0 : i32, i32, i32
  }
}

</mosaic_0001>

<bundles_post_ra>
// kernel: tpu_custom_call.1
= control target key start
LH: loop header
LB: loop body
LE: loop exit
PB: predicated region body
PF: predicated region fallthrough
CT: control target
= control target key end

     0   :  { %9 = vsyncpa [#allocation3], 0  ;;  %v218_v2 = vmov 0   ;;  %s277_s0 = inlined_call_operand.vmem [shape: f32[16,128], index: 0, kind: input, shape index: {}]   ;;  %s278_s1 = inlined_call_operand.vmem [shape: f32[16,1], index: 1, kind: input, shape index: {}]   ;;  %s279_s2 = inlined_call_operand.hbm [shape: f32[1,8,128], index: 2, kind: output, shape index: {0}]   ;;  %s280_s3 = inlined_call_operand.hbm [shape: f32[1,8,128], index: 3, kind: output, shape index: {1}]  }
   0x1   :  { %v95_v0 = vld [vmem:[%s278_s1] sm:$0xff]  ;;  %v96_v1 = vld [vmem:[%s278_s1 + $0x8] sm:$0xff]  ;;  %169 = vset.pattern.permute.xlu0 %v218_v2 }
   0x2   :  { %vm97_vm0 = vcmp.gt.f32.partialorder %v95_v0, 0.0  ;;  %vm98_vm1 = vcmp.gt.f32.partialorder %v96_v1, 0.0 }
   0x3   :  { %10 = vsyncpa [#allocation5], 0  ;;  %v103_v3 = vsel %vm97_vm0, 1, %v218_v2  ;;  %v104_v4 = vsel %vm98_vm1, 1, %v218_v2  ;;  %v101_v6 = vld [vmem:[%s277_s0] sm:$0xff]  ;;  %v102_v7 = vld [vmem:[%s277_s0 + $0x8] sm:$0xff] }
   0x4   :  { %106 = vperm.xlu0 %169, %v103_v3   ;;  %s219_s1 = smov [#allocation2]   ;;  %s220_s21 = smov [#allocation4]  }
   0x5   :  { %s131_s20 = sshll.u32 %s219_s1, 4  ;;  %s141_s22 = sshll.u32 %s220_s21, 4  ;;  %s132_s20 = int_to_ptr.vmem [resolvable:$true] %s131_s20  ;;  %s142_s22 = int_to_ptr.vmem [resolvable:$true] %s141_s22 }
   0x6   :  { %s170_s23 = scalar_lea.vmem %s132_s20, 128  ;;  %p175_p1 = scmp.lt.s32.totalorder %s132_s20, %s132_s20 }
   0x7   :  { %p171_p0 = scmp.ne.s32.totalorder %s132_s20, %s170_s23  ;;  %p176_p2 = scmp.lt.s32.totalorder %s170_s23, %s170_s23 }
   0x8   :  { %109 = vperm.xlu0 %169, %v104_v4  }
   0x9   :  { %p177_p3 = por %p176_p2, %p175_p1 }
   0xb   :  { %p178_p4 = pnand %p177_p3, %p171_p0 }
  0x83   :  { %v107_v5 = vpop.permute.xlu0 %106 }
  0x84   :  { %vm111_vm2 = vcmp.eq.s32.totalorder %v107_v5, 1 }
  0x85   :  { %v113_v8 = vsel %vm111_vm2, %v101_v6, 0.0 }
  0x86   :  { %v120_v11 = vmul.f32 %v113_v8, %v113_v8 }
  0x87   :  { %v110_v9 = vpop.permute.xlu0 %109 }
  0x88   :  { %vm112_vm3 = vcmp.eq.s32.totalorder %v110_v9, 1 }
  0x89   :  { %v114_v10 = vsel %vm112_vm3, %v102_v7, 0.0 }
  0x8a   :  { %v116_v12 = vadd.f32 %v114_v10, %v113_v8  ;;  %v121_v13 = vmul.f32 %v114_v10, %v114_v10 }
  0x8c   :  { %v122_v14 = vadd.f32 %v121_v13, %v120_v11  ;;  %118 = vst [vmem:[#allocation2] sm:$0xff] %v116_v12 }
  0x8d   :  { %181 = shalt.err (!%p178_p4)
}
  0x8e   :  { %s182_s25 = scalar_lea.hbm %s279_s2, 128 }
  0x8f   :  { %p183_p5 = scmp.ne.s32.totalorder %s279_s2, %s182_s25  ;;  %p186_p6 = scmp.lt.u32.totalorder %s182_s25, %s279_s2 }
  0x91   :  { %p188_p7 = pnand %p186_p6, %p183_p5 }
  0x93   :  { %191 = shalt.err (!%p188_p7)
}
  0x94   :  { %134 = dma.vmem_to_hbm [thread:$0]  %s132_s20, 128, %s279_s2, [#allocation3]   ;;  %124 = vst [vmem:[#allocation4] sm:$0xff] %v122_v14 }
  0x95   :  { %s192_s5 = scalar_lea.vmem %s142_s22, 128  ;;  %p197_p9 = scmp.lt.s32.totalorder %s142_s22, %s142_s22 }
  0x96   :  { %p193_p8 = scmp.ne.s32.totalorder %s142_s22, %s192_s5  ;;  %p198_p10 = scmp.lt.s32.totalorder %s192_s5, %s192_s5 }
  0x98   :  { %p199_p11 = por %p198_p10, %p197_p9 }
  0x9a   :  { %p200_p12 = pnand %p199_p11, %p193_p8 }
  0x9c   :  { %203 = shalt.err (!%p200_p12)
}
  0x9d   :  { %s204_s8 = scalar_lea.hbm %s280_s3, 128 }
  0x9e   :  { %p205_p13 = scmp.ne.s32.totalorder %s280_s3, %s204_s8  ;;  %p208_p0 = scmp.lt.u32.totalorder %s204_s8, %s280_s3 }
  0xa0   :  { %p210_p1 = pnand %p208_p0, %p205_p13 }
  0xa2   :  { %213 = shalt.err (!%p210_p1)
}
  0xa3   :  { %144 = dma.vmem_to_hbm [thread:$0]  %s142_s22, 128, %s280_s3, [#allocation5]  }
  0xa4   :  { %214 = dma.done.wait [#allocation3], 128  }
  0xa5   :  { %215 = vsyncadd [#allocation3], 4294967168 }
  0xa6   :  { %216 = dma.done.wait [#allocation5], 128  }
  0xa7   :  { %217 = vsyncadd [#allocation5], 4294967168 }
  0xa8   :  { %151 = vsyncpa [#allocation3], 1 }
  0xa9   :  { %152 = vsyncpa [#allocation5], 1 }

</bundles_post_ra>
